<compile_context>
chip_gen: v7x
topology: tpu7x:2x2x1
jax: 0.10.0
libtpu: 0.0.40
codegen_flags: <defaults>
</compile_context>

<pallas_src>
import jax
import jax.numpy as jnp
from jax import lax
from jax.experimental import pallas as pl
from jax.experimental.pallas import tpu as pltpu
import numpy as np


def _gcn_kernel(dinv_ref, g_ref, dexp_ref, b_ref, out_ref):
    """One grid step computes a lane-dense (TI, TJ*d) output tile.

    Shapes seen by the kernel:
      dinv_ref : [TI, N]     bf16   rows i of dinv                (MXU LHS)
      g_ref    : [N,  TJ*d]  bf16   G[k, j*d+c] = yes[j,k] * (node @ W^T)[k,c]
      dexp_ref : [TI, TJ*d]  f32    dinv[i, j] lane-expanded over c
      b_ref    : [1,  TJ*d]  f32    bias tiled over j
      out_ref  : [TI, TJ*d]  f32    lane-dense output slab
    """
    # Single MXU matmul (bf16 operands, f32 accumulate):
    #   t[i, j*d+c] = sum_k dinv[i,k] * yes[j,k] * node_w[k,c]
    t = jnp.dot(dinv_ref[...], g_ref[...], preferred_element_type=jnp.float32)
    # f32 epilogue on the VPU: out = relu(dinv[i,j] * t + b[c])
    out_ref[...] = jnp.maximum(dexp_ref[...] * t + b_ref[...], 0.0).astype(out_ref.dtype)


def _ti_candidates(n):
    """Row-block sizes: divisors of n that are multiples of 8 (plus n itself),
    largest-first, preferring multiples of 16 (bf16 sublane packing)."""
    cands = {t for t in range(8, n + 1, 8) if n % t == 0}
    cands.add(n)  # full-extent block is always legal
    return sorted(cands, key=lambda t: (t % 16 == 0 or t == n, t), reverse=True)


def _tj_candidates(n, d):
    """Column-block sizes (in graph-node units): tj*d must be a multiple of 128
    (lane-dense, unmasked vst) unless tj == n (full extent)."""
    cands = {t for t in range(1, n + 1) if n % t == 0 and (t * d) % 128 == 0}
    cands.add(n)
    return sorted(cands, reverse=True)


def _footprint_bytes(n, d, ti, tj):
    """Per-step VMEM estimate: streamed blocks double-buffered, grid-constant
    blocks single-buffered (pl.Buffered(1))."""
    n_i, n_j = n // ti, n // tj
    tjd = tj * d

    def buf(nbytes, is_const):
        return nbytes * (1 if is_const else 2)

    return (buf(ti * n * 2, n_i == 1)                      # dinv rows (bf16)
            + buf(n * tjd * 2, n_j == 1)                   # G block (bf16)
            + buf(ti * tjd * 4, n_i == 1 and n_j == 1)     # dinv_exp block (f32)
            + buf(tjd * 4, n_j == 1)                       # bias block (f32)
            + 2 * ti * tjd * 4)                            # output block (f32)


def _pick_tiles(n, d, budget_bytes):
    ti_cands = _ti_candidates(n)
    tj_cands = _tj_candidates(n, d)
    best = None
    for ti in ti_cands:        # prefer the largest row block (amortizes grid
        for tj in tj_cands:    # overhead, fills the MXU M dimension)
            if _footprint_bytes(n, d, ti, tj) <= budget_bytes:
                best = (ti, tj)
                break
        if best is not None:
            break
    if best is None:           # nothing meets the soft budget: take the smallest
        best = (ti_cands[-1], tj_cands[-1])
    ti, tj = best
    # v7x has 2 TensorCores: once row blocks are large (>=128 rows per half),
    # split the i axis so the "parallel" grid has >=2 steps.  Costs only one
    # extra ~0.35us grid step on single-TC chips (v5e/v6e).
    if n >= 256 and n // ti == 1 and n // tj == 1:
        for t in ti_cands:
            if t <= n // 2:
                ti = t
                break
    return ti, tj


def _vmem_capacity_bytes():
    try:
        return int(pltpu.get_tpu_info().vmem_capacity_bytes)
    except Exception:
        return 64 << 20  # conservative default (v7x per-TensorCore VMEM)


def graph_convolution1_forward(node, node_mask, adj_mat, w, b, *, max_tile_bytes=None):
    """Pallas implementation of GraphConvolution1.forward (max_num_keys == N)."""
    del node_mask  # not used by the reference forward
    N, d = node.shape
    assert adj_mat.shape == (N, N)
    assert w.shape == (d, d) and b.shape == (d,)
    nd = N * d
    f32, bf16 = jnp.float32, jnp.bfloat16

    # ---- grid-invariant preprocessing, done exactly once in the wrapper ----
    adj = adj_mat.astype(f32)
    yes = ((adj + adj.T) > 0).astype(f32)                            # [N, N]
    deg = jnp.sum(yes, axis=-1)                                      # [N]
    dinv = lax.rsqrt(deg[None, :] + 1.0 - yes)                       # [N, N] f32
    node_w = node.astype(f32) @ w.astype(f32).T                      # [N, d] (fc folded in)
    # G[k, j*d + c] = yes[j, k] * node_w[k, c]   (bf16 MXU RHS)
    g = (yes.T[:, :, None] * node_w[:, None, :]).reshape(N, nd).astype(bf16)
    # dinv_exp[i, j*d + c] = dinv[i, j]          (f32 epilogue operand)
    dinv_exp = jnp.repeat(dinv, d, axis=1)                           # [N, N*d]
    dinv_bf = dinv.astype(bf16)                                      # MXU LHS
    b_tile = jnp.tile(b.astype(f32), N)[None, :]                     # [1, N*d]

    # ---- tiling / VMEM budget (derived from the chip's reported VMEM) ----
    cap = _vmem_capacity_bytes()
    tile_budget = max_tile_bytes if max_tile_bytes is not None else cap // 3
    ti, tj = _pick_tiles(N, d, tile_budget)
    n_i, n_j = N // ti, N // tj
    tjd = tj * d
    vmem_limit = int(cap * 3 // 4)   # ~25% headroom for compiler-internal scratch

    # Advisory cost: one [TI,N]x[N,TJ*d] matmul per step + f32 epilogue;
    # no transcendentals (rsqrt hoisted to the wrapper).
    cost = pl.CostEstimate(
        flops=2 * N * N * nd + 3 * N * nd,
        transcendentals=0,
        bytes_accessed=2 * N * N + 2 * N * nd + 4 * N * nd + 4 * nd + 4 * N * nd,
    )

    def _call(use_buffer_hints):
        def spec(shape, index_map, is_const):
            if use_buffer_hints and is_const:
                # Grid-invariant block: a single VMEM buffer suffices.
                return pl.BlockSpec(shape, index_map, pipeline_mode=pl.Buffered(1))
            return pl.BlockSpec(shape, index_map)

        return pl.pallas_call(
            _gcn_kernel,
            out_shape=jax.ShapeDtypeStruct((N, nd), f32),
            grid=(n_i, n_j),
            in_specs=[
                spec((ti, N), lambda t, u: (t, 0), n_i == 1),                 # dinv (bf16)
                spec((N, tjd), lambda t, u: (0, u), n_j == 1),                # G (bf16)
                spec((ti, tjd), lambda t, u: (t, u), n_i == 1 and n_j == 1),  # dinv_exp
                spec((1, tjd), lambda t, u: (0, u), n_j == 1),                # bias
            ],
            out_specs=pl.BlockSpec((ti, tjd), lambda t, u: (t, u)),
            compiler_params=pltpu.CompilerParams(
                dimension_semantics=("parallel", "parallel"),
                vmem_limit_bytes=vmem_limit,
            ),
            cost_estimate=cost,
        )(dinv_bf, g, dinv_exp, b_tile)

    try:
        out_flat = _call(True)
    except Exception:
        # Fallback for JAX versions that reject single-buffer pipeline hints.
        out_flat = _call(False)

    # Lane-dense (N, N*d) slab -> reference layout; free row-major reshape.
    return out_flat.reshape(N, N, d)


def _reference_forward(node, adj_mat, w, b):
    """Plain-JAX mirror of the literal PyTorch ops, for verification."""
    N = adj_mat.shape[-1]
    yes = ((adj_mat + adj_mat.T) > 0).astype(jnp.float32)
    degrees = jnp.sum(yes, -1)
    degrees_inv = 1.0 / jnp.sqrt(degrees + 1.0 - yes)
    x = jnp.eye(N, dtype=degrees_inv.dtype)[None] * degrees_inv[..., None]   # [N,N,N]
    normalize = jnp.matmul(jnp.matmul(x, yes), x)                            # [N,N,N]
    x = jnp.matmul(normalize, node)                                          # [N,N,d]
    return jax.nn.relu(x @ w.T + b)


if __name__ == "__main__":
    N = 8         # number of graph nodes (seq length / max_num_keys)
    d_model = 32  # hidden size

    key = jax.random.PRNGKey(0)
    k_adj, k_node, k_w, k_b = jax.random.split(key, 4)

    adj_mat = jax.random.bernoulli(k_adj, p=0.4, shape=(N, N)).astype(jnp.float32)
    node = jax.random.normal(k_node, (N, d_model), dtype=jnp.float32)
    node_mask = jnp.ones((N,), dtype=jnp.float32)   # unused by the forward
    w = 0.1 * jax.random.normal(k_w, (d_model, d_model), dtype=jnp.float32)
    b = 0.01 * jax.random.normal(k_b, (d_model,), dtype=jnp.float32)

    out = jax.block_until_ready(graph_convolution1_forward(node, node_mask, adj_mat, w, b))
    assert out.shape == (N, N, d_model), out.shape
    ref = jax.block_until_ready(_reference_forward(node, adj_mat, w, b))
    np.testing.assert_allclose(np.asarray(out), np.asarray(ref), rtol=1e-2, atol=2e-3)

    # Exercise the j-blocked multi-step grid path with a tiny forced tile budget.
    N2 = 16
    k2a, k2n = jax.random.split(jax.random.PRNGKey(1))
    adj2 = jax.random.bernoulli(k2a, p=0.3, shape=(N2, N2)).astype(jnp.float32)
    node2 = jax.random.normal(k2n, (N2, d_model), dtype=jnp.float32)
    out2 = jax.block_until_ready(
        graph_convolution1_forward(node2, jnp.ones((N2,), jnp.float32), adj2, w, b,
                                   max_tile_bytes=48 << 10))
    ref2 = jax.block_until_ready(_reference_forward(node2, adj2, w, b))
    np.testing.assert_allclose(np.asarray(out2), np.asarray(ref2), rtol=2e-2, atol=5e-3)

    print("KERNEL_OK")
</pallas_src>

<mosaic_0001>
module attributes {stable_mosaic.version = 11 : i64} {
  func.func @_gcn_kernel(%arg0: i32, %arg1: i32, %arg2: memref<8x8xbf16, #tpu.memory_space<vmem>>, %arg3: memref<8x256xbf16, #tpu.memory_space<vmem>>, %arg4: memref<8x256xf32, #tpu.memory_space<vmem>>, %arg5: memref<1x256xf32, #tpu.memory_space<vmem>>, %arg6: memref<8x256xf32, #tpu.memory_space<vmem>>) attributes {dimension_semantics = [#tpu.dimension_semantics<parallel>, #tpu.dimension_semantics<parallel>], iteration_bounds = array<i64: 1, 1>, scalar_prefetch = 0 : i64, scratch_operands = 0 : i64, tpu.core_type = #tpu.core_type<tc>, window_params = [{pipeline_mode = #tpu.pipeline_mode<synchronous>, transform_indices = @transform_0, window_bounds = array<i64: 8, 8>}, {pipeline_mode = #tpu.pipeline_mode<synchronous>, transform_indices = @transform_1, window_bounds = array<i64: 8, 256>}, {pipeline_mode = #tpu.pipeline_mode<synchronous>, transform_indices = @transform_2, window_bounds = array<i64: 8, 256>}, {pipeline_mode = #tpu.pipeline_mode<synchronous>, transform_indices = @transform_3, window_bounds = array<i64: 1, 256>}, {transform_indices = @transform_4, window_bounds = array<i64: 8, 256>}]} {
    %c0 = arith.constant 0 : index
    %c0_0 = arith.constant 0 : index
    %0 = vector.load %arg2[%c0, %c0_0] : memref<8x8xbf16, #tpu.memory_space<vmem>>, vector<8x8xbf16>
    %c0_1 = arith.constant 0 : index
    %c0_2 = arith.constant 0 : index
    %1 = vector.load %arg3[%c0_1, %c0_2] : memref<8x256xbf16, #tpu.memory_space<vmem>>, vector<8x256xbf16>
    %cst = arith.constant dense<0.000000e+00> : vector<8x256xf32>
    %2 = tpu.matmul %0, %1, %cst {dimension_numbers = #tpu.dot_dimension_numbers<[1], [0], [0], [1], [0, 0, 1, 1], [], []>} : vector<8x8xbf16>, vector<8x256xbf16>, vector<8x256xf32> -> vector<8x256xf32>
    %c0_3 = arith.constant 0 : index
    %c0_4 = arith.constant 0 : index
    %3 = vector.load %arg4[%c0_3, %c0_4] : memref<8x256xf32, #tpu.memory_space<vmem>>, vector<8x256xf32>
    %4 = arith.mulf %3, %2 : vector<8x256xf32>
    %c0_5 = arith.constant 0 : index
    %c0_6 = arith.constant 0 : index
    %5 = vector.load %arg5[%c0_5, %c0_6] : memref<1x256xf32, #tpu.memory_space<vmem>>, vector<1x256xf32>
    %6 = vector.broadcast %5 : vector<1x256xf32> to vector<8x256xf32>
    %7 = arith.addf %4, %6 : vector<8x256xf32>
    %cst_7 = arith.constant 0.000000e+00 : f32
    %8 = vector.broadcast %cst_7 : f32 to vector<8x256xf32>
    %9 = arith.maximumf %7, %8 : vector<8x256xf32>
    %c0_8 = arith.constant 0 : index
    %c0_9 = arith.constant 0 : index
    %10 = vector.load %arg6[%c0_8, %c0_9] : memref<8x256xf32, #tpu.memory_space<vmem>>, vector<8x256xf32>
    tpu.vector_store %arg6[%c0_8, %c0_9], %9 {strides = array<i32>} : memref<8x256xf32, #tpu.memory_space<vmem>>, vector<8x256xf32>,
    return
  }
  func.func @transform_0(%arg0: i32, %arg1: i32) -> (i32, i32) {
    %c0_i32 = arith.constant 0 : i32
    %c0_i32_0 = arith.constant 0 : i32
    return %arg0, %c0_i32 : i32, i32
  }
  func.func @transform_1(%arg0: i32, %arg1: i32) -> (i32, i32) {
    %c0_i32 = arith.constant 0 : i32
    %c0_i32_0 = arith.constant 0 : i32
    return %c0_i32, %arg1 : i32, i32
  }
  func.func @transform_2(%arg0: i32, %arg1: i32) -> (i32, i32) {
    %c0_i32 = arith.constant 0 : i32
    return %arg0, %arg1 : i32, i32
  }
  func.func @transform_3(%arg0: i32, %arg1: i32) -> (i32, i32) {
    %c0_i32 = arith.constant 0 : i32
    %c0_i32_0 = arith.constant 0 : i32
    return %c0_i32, %arg1 : i32, i32
  }
  func.func @transform_4(%arg0: i32, %arg1: i32) -> (i32, i32) {
    %c0_i32 = arith.constant 0 : i32
    return %arg0, %arg1 : i32, i32
  }
}

module attributes {stable_mosaic.version = 11 : i64} {
  func.func @_gcn_kernel(%arg0: i32, %arg1: i32, %arg2: memref<8x8xbf16, #tpu.memory_space<vmem>>, %arg3: memref<8x256xbf16, #tpu.memory_space<vmem>>, %arg4: memref<8x256xf32, #tpu.memory_space<vmem>>, %arg5: memref<1x256xf32, #tpu.memory_space<vmem>>, %arg6: memref<8x256xf32, #tpu.memory_space<vmem>>) attributes {dimension_semantics = [#tpu.dimension_semantics<parallel>, #tpu.dimension_semantics<parallel>], iteration_bounds = array<i64: 1, 1>, scalar_prefetch = 0 : i64, scratch_operands = 0 : i64, tpu.core_type = #tpu.core_type<tc>, window_params = [{transform_indices = @transform_0, window_bounds = array<i64: 8, 8>}, {transform_indices = @transform_1, window_bounds = array<i64: 8, 256>}, {transform_indices = @transform_2, window_bounds = array<i64: 8, 256>}, {transform_indices = @transform_3, window_bounds = array<i64: 1, 256>}, {transform_indices = @transform_4, window_bounds = array<i64: 8, 256>}]} {
    %c0 = arith.constant 0 : index
    %c0_0 = arith.constant 0 : index
    %0 = vector.load %arg2[%c0, %c0_0] : memref<8x8xbf16, #tpu.memory_space<vmem>>, vector<8x8xbf16>
    %c0_1 = arith.constant 0 : index
    %c0_2 = arith.constant 0 : index
    %1 = vector.load %arg3[%c0_1, %c0_2] : memref<8x256xbf16, #tpu.memory_space<vmem>>, vector<8x256xbf16>
    %cst = arith.constant dense<0.000000e+00> : vector<8x256xf32>
    %2 = tpu.matmul %0, %1, %cst {dimension_numbers = #tpu.dot_dimension_numbers<[1], [0], [0], [1], [0, 0, 1, 1], [], []>} : vector<8x8xbf16>, vector<8x256xbf16>, vector<8x256xf32> -> vector<8x256xf32>
    %c0_3 = arith.constant 0 : index
    %c0_4 = arith.constant 0 : index
    %3 = vector.load %arg4[%c0_3, %c0_4] : memref<8x256xf32, #tpu.memory_space<vmem>>, vector<8x256xf32>
    %4 = arith.mulf %3, %2 : vector<8x256xf32>
    %c0_5 = arith.constant 0 : index
    %c0_6 = arith.constant 0 : index
    %5 = vector.load %arg5[%c0_5, %c0_6] : memref<1x256xf32, #tpu.memory_space<vmem>>, vector<1x256xf32>
    %6 = vector.broadcast %5 : vector<1x256xf32> to vector<8x256xf32>
    %7 = arith.addf %4, %6 : vector<8x256xf32>
    %cst_7 = arith.constant 0.000000e+00 : f32
    %8 = vector.broadcast %cst_7 : f32 to vector<8x256xf32>
    %9 = arith.maximumf %7, %8 : vector<8x256xf32>
    %c0_8 = arith.constant 0 : index
    %c0_9 = arith.constant 0 : index
    %10 = vector.load %arg6[%c0_8, %c0_9] : memref<8x256xf32, #tpu.memory_space<vmem>>, vector<8x256xf32>
    tpu.vector_store %arg6[%c0_8, %c0_9], %9 {strides = array<i32>} : memref<8x256xf32, #tpu.memory_space<vmem>>, vector<8x256xf32>,
    return
  }
  func.func @transform_0(%arg0: i32, %arg1: i32) -> (i32, i32) {
    %c0_i32 = arith.constant 0 : i32
    %c0_i32_0 = arith.constant 0 : i32
    return %arg0, %c0_i32 : i32, i32
  }
  func.func @transform_1(%arg0: i32, %arg1: i32) -> (i32, i32) {
    %c0_i32 = arith.constant 0 : i32
    %c0_i32_0 = arith.constant 0 : i32
    return %c0_i32, %arg1 : i32, i32
  }
  func.func @transform_2(%arg0: i32, %arg1: i32) -> (i32, i32) {
    %c0_i32 = arith.constant 0 : i32
    return %arg0, %arg1 : i32, i32
  }
  func.func @transform_3(%arg0: i32, %arg1: i32) -> (i32, i32) {
    %c0_i32 = arith.constant 0 : i32
    %c0_i32_0 = arith.constant 0 : i32
    return %c0_i32, %arg1 : i32, i32
  }
  func.func @transform_4(%arg0: i32, %arg1: i32) -> (i32, i32) {
    %c0_i32 = arith.constant 0 : i32
    return %arg0, %arg1 : i32, i32
  }
}

</mosaic_0001>

<bundles_post_ra>
// kernel: tpu_custom_call.1
= control target key start
LH: loop header
LB: loop body
LE: loop exit
PB: predicated region body
PF: predicated region fallthrough
CT: control target
= control target key end

     0   :  { %9 = vsyncpa [#allocation3], 0  ;;  %s337_s0 = inlined_call_operand.hbm [shape: bf16[8,8], index: 0, kind: input, shape index: {}]   ;;  %s338_s1 = inlined_call_operand.hbm [shape: bf16[8,256], index: 1, kind: input, shape index: {}]   ;;  %s339_s2 = inlined_call_operand.hbm [shape: f32[8,256], index: 2, kind: input, shape index: {}]   ;;  %s340_s3 = inlined_call_operand.vmem [shape: f32[1,256], index: 3, kind: input, shape index: {}]   ;;  %s341_s4 = inlined_call_operand.hbm [shape: f32[8,256], index: 4, kind: output, shape index: {}]  }
   0x1   :  { %10 = vsyncpa [#allocation6], 0 }
   0x2   :  { %11 = vsyncpa [#allocation4], 0  ;;  %s256_s15 = smov [#allocation5]   ;;  %s257_s17 = smov [#allocation2]  }
   0x3   :  { %s28_s16 = sshll.u32 %s256_s15, 4  ;;  %s18_s18 = sshll.u32 %s257_s17, 4  ;;  %s29_s16 = int_to_ptr.vmem [resolvable:$true] %s28_s16  ;;  %s19_s18 = int_to_ptr.vmem [resolvable:$true] %s18_s18 }
   0x4   :  { %s162_s21 = scalar_lea.hbm %s338_s1, 128 }
   0x5   :  { %p163_p0 = scmp.ne.s32.totalorder %s338_s1, %s162_s21  ;;  %p166_p1 = scmp.lt.u32.totalorder %s162_s21, %s338_s1 }
   0x7   :  { %p168_p2 = pnand %p166_p1, %p163_p0 }
   0x9   :  { %171 = shalt.err (!%p168_p2)
}
   0xa   :  { %s172_s26 = scalar_lea.vmem %s29_s16, 128  ;;  %p177_p4 = scmp.lt.s32.totalorder %s29_s16, %s29_s16 }
   0xb   :  { %p173_p3 = scmp.ne.s32.totalorder %s29_s16, %s172_s26  ;;  %p178_p5 = scmp.lt.s32.totalorder %s172_s26, %s172_s26 }
   0xd   :  { %p179_p6 = por %p178_p5, %p177_p4 }
   0xf   :  { %p180_p7 = pnand %p179_p6, %p173_p3 }
  0x11   :  { %183 = shalt.err (!%p180_p7)
}
  0x12   :  { %31 = dma.hbm_to_vmem [thread:$0]  %s338_s1, 128, %s29_s16, [#allocation6]  }
  0x13   :  { %s184_s5 = scalar_lea.hbm %s337_s0, 64 }
  0x14   :  { %p185_p8 = scmp.ne.s32.totalorder %s337_s0, %s184_s5  ;;  %p188_p9 = scmp.lt.u32.totalorder %s184_s5, %s337_s0 }
  0x16   :  { %p190_p10 = pnand %p188_p9, %p185_p8 }
  0x18   :  { %193 = shalt.err (!%p190_p10)
}
  0x19   :  { %s194_s10 = scalar_lea.vmem %s19_s18, 64  ;;  %p199_p12 = scmp.lt.s32.totalorder %s19_s18, %s19_s18 }
  0x1a   :  { %p195_p11 = scmp.ne.s32.totalorder %s19_s18, %s194_s10  ;;  %p200_p13 = scmp.lt.s32.totalorder %s194_s10, %s194_s10 }
  0x1c   :  { %p201_p0 = por %p200_p13, %p199_p12 }
  0x1e   :  { %p202_p1 = pnand %p201_p0, %p195_p11 }
  0x20   :  { %205 = shalt.err (!%p202_p1)
}
  0x21   :  { %21 = dma.hbm_to_vmem [thread:$0]  %s337_s0, 64, %s19_s18, [#allocation3]  }
  0x22   :  { %s258_s12 = smov [#allocation7]   ;;  %s206_s16 = scalar_lea.hbm %s339_s2, 256 }
  0x23   :  { %s38_s13 = sshll.u32 %s258_s12, 4  ;;  %p207_p2 = scmp.ne.s32.totalorder %s339_s2, %s206_s16  ;;  %s39_s13 = int_to_ptr.vmem [resolvable:$true] %s38_s13 }
  0x24   :  { %p210_p3 = scmp.lt.u32.totalorder %s206_s16, %s339_s2 }
  0x26   :  { %p212_p4 = pnand %p210_p3, %p207_p2 }
  0x28   :  { %215 = shalt.err (!%p212_p4)
}
  0x29   :  { %s216_s22 = scalar_lea.vmem %s39_s13, 256  ;;  %p221_p6 = scmp.lt.s32.totalorder %s39_s13, %s39_s13 }
  0x2a   :  { %p217_p5 = scmp.ne.s32.totalorder %s39_s13, %s216_s22  ;;  %p222_p7 = scmp.lt.s32.totalorder %s216_s22, %s216_s22 }
  0x2c   :  { %p223_p8 = por %p222_p7, %p221_p6 }
  0x2e   :  { %p224_p9 = pnand %p223_p8, %p217_p5 }
  0x30   :  { %227 = shalt.err (!%p224_p9)
}
  0x31   :  { %41 = dma.hbm_to_vmem [thread:$0]  %s339_s2, 256, %s39_s13, [#allocation6]  }
  0x32   :  { %250 = dma.done.wait [#allocation3], 64  }
  0x33   :  { %251 = vsyncadd [#allocation3], 4294967232 }
  0x34   :  { %252 = dma.done.wait [#allocation6], 384  }
  0x35   :  { %253 = vsyncadd [#allocation6], 4294966912  ;;  %v259_v0 = vmov 0   ;;  %v55_v1 = vld [vmem:[#allocation5] sm:$0xff]  ;;  %vm65_vm0 = vcmask 1043456   ;;  %vm61_vm1 = vcmask 64512   ;;  %v119_v6 = vlaneseq }
  0x36   :  { %104 = vmatprep.mubr.bf16.mxu0 %v259_v0  ;;  %v152_v2 = vcombine.high %v55_v1, %v55_v1  ;;  %v151_v3 = vcombine.low %v55_v1, %v55_v1  ;;  %v54_v5 = vld [vmem:[#allocation2] sm:$0xf]  ;;  %v113_v11 = vld [vmem:[#allocation7] sm:$0xff]  ;;  %v114_v13 = vld [vmem:[#allocation7 + $0x8] sm:$0xff]  ;;  %s260_s24 = smov [#allocation8]  }
  0x37   :  { %v120_v7 = vshrl.u32 %v119_v6, 7  ;;  %v117_v9 = vld [vmem:[%s340_s3] sm:$0x3]  ;;  %s141_s25 = sshll.u32 %s260_s24, 4  ;;  %s142_s25 = int_to_ptr.vmem [resolvable:$true] %s141_s25 }
  0x38   :  { %153 = vmatprep.subr.msk.bf16.mxu0 %vm65_vm0, %v152_v2  ;;  %v67_v4 = vsel %vm65_vm0, %v151_v3, 0  ;;  %s228_s3 = scalar_lea.vmem %s142_s25, 256  ;;  %p233_p11 = scmp.lt.s32.totalorder %s142_s25, %s142_s25 }
  0x39   :  { %73 = vmatpush1.bf16.msra.mxu0 %v67_v4  ;;  %v121_v8 = vsub.s32 0, %v120_v7  ;;  %v125_v10 = vsub.s32 1, %v120_v7  ;;  %p229_p10 = scmp.ne.s32.totalorder %s142_s25, %s228_s3  ;;  %p234_p12 = scmp.lt.s32.totalorder %s228_s3, %s228_s3 }
  0x3b   :  { %v122_v12 = vrot.slane %v117_v9, %v121_v8  ;;  %v126_v15 = vrot.slane %v117_v9, %v125_v10  ;;  %p235_p13 = por %p234_p12, %p233_p11 }
  0x3c   :  { %154 = vmatmul.mubr.msk.bf16.vlgmr.msra.gmra.mrb[0].mxu0 %vm61_vm1, %v54_v5 }
  0x3d   :  { %p236_p0 = pnand %p235_p13, %p229_p10 }
 0x10f   :  { %v106_v14 = vpop.f32.mrb[0].mxu0 }
 0x110   :  { %v115_v16 = vmul.f32 %v113_v11, %v106_v14  ;;  %v108_v17 = vpop.f32.mrb[1].mxu0 }
 0x111   :  { %v116_v18 = vmul.f32 %v114_v13, %v108_v17  ;;  %v110_v19 = vpop.f32.mrb[2].mxu0 }
 0x112   :  { %v129_v20 = vadd.f32 %v122_v12, %v115_v16  ;;  %v111_v21 = vpop.f32.mrb[3].mxu0 }
 0x113   :  { %v130_v22 = vadd.f32 %v126_v15, %v116_v18 }
 0x114   :  { %v131_v23 = vmax.f32 %v129_v20, 0.0 }
 0x115   :  { %v132_v24 = vmax.f32 %v130_v22, 0.0 }
 0x116   :  { %133 = vst [vmem:[#allocation8] sm:$0xff] %v131_v23 }
 0x117   :  { %134 = vst [vmem:[#allocation8 + $0x8] sm:$0xff] %v132_v24 }
 0x118   :  { %239 = shalt.err (!%p236_p0)
}
 0x119   :  { %s240_s28 = scalar_lea.hbm %s341_s4, 256 }
 0x11a   :  { %p241_p1 = scmp.ne.s32.totalorder %s341_s4, %s240_s28  ;;  %p244_p2 = scmp.lt.u32.totalorder %s240_s28, %s341_s4 }
 0x11c   :  { %p246_p3 = pnand %p244_p2, %p241_p1 }
 0x11e   :  { %249 = shalt.err (!%p246_p3)
}
 0x11f   :  { %144 = dma.vmem_to_hbm [thread:$0]  %s142_s25, 256, %s341_s4, [#allocation4]  }
 0x120   :  { %254 = dma.done.wait [#allocation4], 256  }
 0x121   :  { %255 = vsyncadd [#allocation4], 4294967040 }
 0x122   :  { %148 = vsyncpa [#allocation3], 1 }
 0x123   :  { %149 = vsyncpa [#allocation6], 1 }
 0x124   :  { %150 = vsyncpa [#allocation4], 1 }

// kernel: tpu_custom_call.1
= control target key start
LH: loop header
LB: loop body
LE: loop exit
PB: predicated region body
PF: predicated region fallthrough
CT: control target
= control target key end

     0   :  { %9 = vsyncpa [#allocation3], 0  ;;  %s337_s0 = inlined_call_operand.hbm [shape: bf16[8,8], index: 0, kind: input, shape index: {}]   ;;  %s338_s1 = inlined_call_operand.hbm [shape: bf16[8,256], index: 1, kind: input, shape index: {}]   ;;  %s339_s2 = inlined_call_operand.hbm [shape: f32[8,256], index: 2, kind: input, shape index: {}]   ;;  %s340_s3 = inlined_call_operand.vmem [shape: f32[1,256], index: 3, kind: input, shape index: {}]   ;;  %s341_s4 = inlined_call_operand.hbm [shape: f32[8,256], index: 4, kind: output, shape index: {}]  }
   0x1   :  { %10 = vsyncpa [#allocation6], 0 }
   0x2   :  { %11 = vsyncpa [#allocation4], 0  ;;  %s256_s15 = smov [#allocation5]   ;;  %s257_s17 = smov [#allocation2]  }
   0x3   :  { %s28_s16 = sshll.u32 %s256_s15, 4  ;;  %s18_s18 = sshll.u32 %s257_s17, 4  ;;  %s29_s16 = int_to_ptr.vmem [resolvable:$true] %s28_s16  ;;  %s19_s18 = int_to_ptr.vmem [resolvable:$true] %s18_s18 }
   0x4   :  { %s162_s21 = scalar_lea.hbm %s338_s1, 128 }
   0x5   :  { %p163_p0 = scmp.ne.s32.totalorder %s338_s1, %s162_s21  ;;  %p166_p1 = scmp.lt.u32.totalorder %s162_s21, %s338_s1 }
   0x7   :  { %p168_p2 = pnand %p166_p1, %p163_p0 }
   0x9   :  { %171 = shalt.err (!%p168_p2)
}
   0xa   :  { %s172_s26 = scalar_lea.vmem %s29_s16, 128  ;;  %p177_p4 = scmp.lt.s32.totalorder %s29_s16, %s29_s16 }
   0xb   :  { %p173_p3 = scmp.ne.s32.totalorder %s29_s16, %s172_s26  ;;  %p178_p5 = scmp.lt.s32.totalorder %s172_s26, %s172_s26 }
   0xd   :  { %p179_p6 = por %p178_p5, %p177_p4 }
   0xf   :  { %p180_p7 = pnand %p179_p6, %p173_p3 }
  0x11   :  { %183 = shalt.err (!%p180_p7)
}
  0x12   :  { %31 = dma.hbm_to_vmem [thread:$0]  %s338_s1, 128, %s29_s16, [#allocation6]  }
  0x13   :  { %s184_s5 = scalar_lea.hbm %s337_s0, 64 }
  0x14   :  { %p185_p8 = scmp.ne.s32.totalorder %s337_s0, %s184_s5  ;;  %p188_p9 = scmp.lt.u32.totalorder %s184_s5, %s337_s0 }
  0x16   :  { %p190_p10 = pnand %p188_p9, %p185_p8 }
  0x18   :  { %193 = shalt.err (!%p190_p10)
}
  0x19   :  { %s194_s10 = scalar_lea.vmem %s19_s18, 64  ;;  %p199_p12 = scmp.lt.s32.totalorder %s19_s18, %s19_s18 }
  0x1a   :  { %p195_p11 = scmp.ne.s32.totalorder %s19_s18, %s194_s10  ;;  %p200_p13 = scmp.lt.s32.totalorder %s194_s10, %s194_s10 }
  0x1c   :  { %p201_p0 = por %p200_p13, %p199_p12 }
  0x1e   :  { %p202_p1 = pnand %p201_p0, %p195_p11 }
  0x20   :  { %205 = shalt.err (!%p202_p1)
}
  0x21   :  { %21 = dma.hbm_to_vmem [thread:$0]  %s337_s0, 64, %s19_s18, [#allocation3]  }
  0x22   :  { %s258_s12 = smov [#allocation7]   ;;  %s206_s16 = scalar_lea.hbm %s339_s2, 256 }
  0x23   :  { %s38_s13 = sshll.u32 %s258_s12, 4  ;;  %p207_p2 = scmp.ne.s32.totalorder %s339_s2, %s206_s16  ;;  %s39_s13 = int_to_ptr.vmem [resolvable:$true] %s38_s13 }
  0x24   :  { %p210_p3 = scmp.lt.u32.totalorder %s206_s16, %s339_s2 }
  0x26   :  { %p212_p4 = pnand %p210_p3, %p207_p2 }
  0x28   :  { %215 = shalt.err (!%p212_p4)
}
  0x29   :  { %s216_s22 = scalar_lea.vmem %s39_s13, 256  ;;  %p221_p6 = scmp.lt.s32.totalorder %s39_s13, %s39_s13 }
  0x2a   :  { %p217_p5 = scmp.ne.s32.totalorder %s39_s13, %s216_s22  ;;  %p222_p7 = scmp.lt.s32.totalorder %s216_s22, %s216_s22 }
  0x2c   :  { %p223_p8 = por %p222_p7, %p221_p6 }
  0x2e   :  { %p224_p9 = pnand %p223_p8, %p217_p5 }
  0x30   :  { %227 = shalt.err (!%p224_p9)
}
  0x31   :  { %41 = dma.hbm_to_vmem [thread:$0]  %s339_s2, 256, %s39_s13, [#allocation6]  }
  0x32   :  { %250 = dma.done.wait [#allocation3], 64  }
  0x33   :  { %251 = vsyncadd [#allocation3], 4294967232 }
  0x34   :  { %252 = dma.done.wait [#allocation6], 384  }
  0x35   :  { %253 = vsyncadd [#allocation6], 4294966912  ;;  %v259_v0 = vmov 0   ;;  %v55_v1 = vld [vmem:[#allocation5] sm:$0xff]  ;;  %vm65_vm0 = vcmask 1043456   ;;  %vm61_vm1 = vcmask 64512   ;;  %v119_v6 = vlaneseq }
  0x36   :  { %104 = vmatprep.mubr.bf16.mxu0 %v259_v0  ;;  %v152_v2 = vcombine.high %v55_v1, %v55_v1  ;;  %v151_v3 = vcombine.low %v55_v1, %v55_v1  ;;  %v54_v5 = vld [vmem:[#allocation2] sm:$0xf]  ;;  %v113_v11 = vld [vmem:[#allocation7] sm:$0xff]  ;;  %v114_v13 = vld [vmem:[#allocation7 + $0x8] sm:$0xff]  ;;  %s260_s24 = smov [#allocation8]  }
  0x37   :  { %v120_v7 = vshrl.u32 %v119_v6, 7  ;;  %v117_v9 = vld [vmem:[%s340_s3] sm:$0x3]  ;;  %s141_s25 = sshll.u32 %s260_s24, 4  ;;  %s142_s25 = int_to_ptr.vmem [resolvable:$true] %s141_s25 }
  0x38   :  { %153 = vmatprep.subr.msk.bf16.mxu0 %vm65_vm0, %v152_v2  ;;  %v67_v4 = vsel %vm65_vm0, %v151_v3, 0  ;;  %s228_s3 = scalar_lea.vmem %s142_s25, 256  ;;  %p233_p11 = scmp.lt.s32.totalorder %s142_s25, %s142_s25 }
  0x39   :  { %73 = vmatpush1.bf16.msra.mxu0 %v67_v4  ;;  %v121_v8 = vsub.s32 0, %v120_v7  ;;  %v125_v10 = vsub.s32 1, %v120_v7  ;;  %p229_p10 = scmp.ne.s32.totalorder %s142_s25, %s228_s3  ;;  %p234_p12 = scmp.lt.s32.totalorder %s228_s3, %s228_s3 }
  0x3b   :  { %v122_v12 = vrot.slane %v117_v9, %v121_v8  ;;  %v126_v15 = vrot.slane %v117_v9, %v125_v10  ;;  %p235_p13 = por %p234_p12, %p233_p11 }
  0x3c   :  { %154 = vmatmul.mubr.msk.bf16.vlgmr.msra.gmra.mrb[0].mxu0 %vm61_vm1, %v54_v5 }
  0x3d   :  { %p236_p0 = pnand %p235_p13, %p229_p10 }
 0x10f   :  { %v106_v14 = vpop.f32.mrb[0].mxu0 }
 0x110   :  { %v115_v16 = vmul.f32 %v113_v11, %v106_v14  ;;  %v108_v17 = vpop.f32.mrb[1].mxu0 }
 0x111   :  { %v116_v18 = vmul.f32 %v114_v13, %v108_v17  ;;  %v110_v19 = vpop.f32.mrb[2].mxu0 }
 0x112   :  { %v129_v20 = vadd.f32 %v122_v12, %v115_v16  ;;  %v111_v21 = vpop.f32.mrb[3].mxu0 }
 0x113   :  { %v130_v22 = vadd.f32 %v126_v15, %v116_v18 }
 0x114   :  { %v131_v23 = vmax.f32 %v129_v20, 0.0 }
 0x115   :  { %v132_v24 = vmax.f32 %v130_v22, 0.0 }
 0x116   :  { %133 = vst [vmem:[#allocation8] sm:$0xff] %v131_v23 }
 0x117   :  { %134 = vst [vmem:[#allocation8 + $0x8] sm:$0xff] %v132_v24 }
 0x118   :  { %239 = shalt.err (!%p236_p0)
}
 0x119   :  { %s240_s28 = scalar_lea.hbm %s341_s4, 256 }
 0x11a   :  { %p241_p1 = scmp.ne.s32.totalorder %s341_s4, %s240_s28  ;;  %p244_p2 = scmp.lt.u32.totalorder %s240_s28, %s341_s4 }
 0x11c   :  { %p246_p3 = pnand %p244_p2, %p241_p1 }
 0x11e   :  { %249 = shalt.err (!%p246_p3)
}
 0x11f   :  { %144 = dma.vmem_to_hbm [thread:$0]  %s142_s25, 256, %s341_s4, [#allocation4]  }
 0x120   :  { %254 = dma.done.wait [#allocation4], 256  }
 0x121   :  { %255 = vsyncadd [#allocation4], 4294967040 }
 0x122   :  { %148 = vsyncpa [#allocation3], 1 }
 0x123   :  { %149 = vsyncpa [#allocation6], 1 }
 0x124   :  { %150 = vsyncpa [#allocation4], 1 }

</bundles_post_ra>
